<compile_context>
chip_gen: v7x
topology: tpu7x:2x2x1
jax: 0.10.0
libtpu: 0.0.40
codegen_flags: <defaults>
</compile_context>

<pallas_src>
import functools

import jax
import jax.numpy as jnp
from jax import lax
from jax.experimental import pallas as pl
from jax.experimental.pallas import tpu as pltpu

_BIG = 1e9  # distance for padded gallery columns -> their rank terms are exactly 0


def _round_up(x, m):
    return ((x + m - 1) // m) * m


def _sigmoid(z, half_inv_t):
    # sigmoid(z / t) == 0.5 * tanh(z * (0.5 / t)) + 0.5  -> one EUP tanh per element
    return 0.5 * jnp.tanh(z * half_inv_t) + 0.5


def _pick_gallery_chunk(tq, bp, budget_elems=1 << 20):
    """Gallery chunk A: largest 128-multiple dividing bp keeping [tq, A, bp] small."""
    if tq * bp * bp <= budget_elems:
        return bp                      # single chunk -> no in-kernel dynamic slicing
    a = max(128, (budget_elems // (tq * bp)) // 128 * 128)
    while bp % a:                      # bp is a multiple of 128 in this branch
        a -= 128
    return a


def _surrogate_precision_kernel(x_ref, labc_ref, labr_ref, prec_ref, d_ref, *,
                                k, t1, t2, b_real, tq, a_chunk):
    i = pl.program_id(0)
    Bp, D = x_ref.shape
    TQ = tq
    q0 = pl.multiple_of(i * TQ, TQ)

    half_inv_t1 = 0.5 / t1
    half_inv_t2 = 0.5 / t2

    x = x_ref[...]                                    # [Bp, D]  gallery (resident)
    q = x_ref[pl.ds(q0, TQ), :]                       # [TQ, D]  query tile
    lab_q = labc_ref[pl.ds(q0, TQ), :]                # [TQ, 1]
    lab_g = labr_ref[...]                             # [1, Bp]

    # --- pairwise euclidean distances for this query tile (MXU gram) ---
    q_sq = jnp.sum(q * q, axis=1, keepdims=True)      # [TQ, 1]
    g_sq = lax.dot_general(jnp.ones((1, D), jnp.float32), x * x,
                           (((1,), (1,)), ((), ())),
                           preferred_element_type=jnp.float32)        # [1, Bp]
    gram = lax.dot_general(q, x, (((1,), (1,)), ((), ())),
                           preferred_element_type=jnp.float32)        # [TQ, Bp]
    d = jnp.sqrt(jnp.maximum(q_sq + g_sq - 2.0 * gram, 0.0))

    rows_g = q0 + lax.broadcasted_iota(jnp.int32, (TQ, Bp), 0)        # global query idx
    cols = lax.broadcasted_iota(jnp.int32, (TQ, Bp), 1)               # gallery idx
    # exact-zero diagonal (torch.cdist(x, x) semantics; load-bearing for rank)
    d = jnp.where(rows_g == cols, 0.0, d)
    if b_real < Bp:
        d = jnp.where(cols >= b_real, _BIG, d)        # padded gallery columns

    # --- rank[r, b] = sum_a sigmoid((d[r, b] - d[r, a]) / t2), chunked over a ---
    num_chunks = Bp // a_chunk
    if num_chunks == 1:
        diffs = d[:, None, :] - d[:, :, None]                         # [TQ, Bp, Bp]
        rank = jnp.sum(_sigmoid(diffs, half_inv_t2), axis=1)
    else:
        d_ref[...] = d
        d_b = d[:, None, :]                                           # hoisted, invariant

        def body(c, acc):
            a0 = pl.multiple_of(c * a_chunk, a_chunk)
            d_a = d_ref[:, pl.ds(a0, a_chunk)]                        # [TQ, A]
            diffs = d_b - d_a[:, :, None]                             # [TQ, A, Bp]
            return acc + jnp.sum(_sigmoid(diffs, half_inv_t2), axis=1)

        rank = lax.fori_loop(0, num_chunks, body,
                             jnp.zeros((TQ, Bp), jnp.float32),
                             unroll=min(4, num_chunks))

    # --- surrogate precision for this tile (mask fused, never a full [B,B] buffer) ---
    same = lab_q == lab_g                                             # [TQ, Bp]
    if b_real < Bp:
        same = jnp.logical_and(
            same, jnp.logical_and(cols < b_real, rows_g < b_real))
    mask = same.astype(jnp.float32)

    num = jnp.sum(_sigmoid(k - rank, half_inv_t1) * mask, axis=1, keepdims=True)
    den = jnp.minimum(jnp.sum(mask, axis=1, keepdims=True), k)
    den = jnp.maximum(den, 1.0)          # only affects padded query rows (mask == 0)
    prec_ref[...] = (num / den).astype(prec_ref.dtype)


def surrogate_precision_loss(features, labels, *, k, temperature1=1.0,
                             temperature2=0.01):
    """Equivalent of SurrogatePrecision(k, t1, t2, reduction='mean')(features, labels)."""
    B, D = features.shape
    k_eff = float(k + 1)      # module adds 1: each query sees itself at rank 1

    features = features.astype(jnp.float32)
    # Distances are translation-invariant; centering reduces gram cancellation,
    # which t2 = 0.01 would otherwise amplify 100x inside the rank sigmoid.
    features = features - jnp.mean(features, axis=0, keepdims=True)
    labels = labels.reshape(B).astype(jnp.int32)

    # --- tiling policy ---
    if B <= 64:
        tq = _round_up(B, 8)             # single query tile
        bp = tq
    else:
        tq = 8                           # small query tiles keep the diff tensor bounded
        bp = _round_up(B, 128)           # 128-multiple -> lane-aligned gallery chunks
    a_chunk = _pick_gallery_chunk(tq, bp)

    if bp != B:
        features = jnp.pad(features, ((0, bp - B), (0, 0)))
        labels = jnp.pad(labels, (0, bp - B))
    lab_col = labels.reshape(bp, 1)
    lab_row = labels.reshape(1, bp)

    kernel = functools.partial(
        _surrogate_precision_kernel,
        k=k_eff, t1=float(temperature1), t2=float(temperature2),
        b_real=B, tq=tq, a_chunk=a_chunk)

    prec = pl.pallas_call(
        kernel,
        grid=(bp // tq,),
        out_shape=jax.ShapeDtypeStruct((bp, 1), jnp.float32),
        in_specs=[
            pl.BlockSpec((bp, D), lambda i: (0, 0)),   # features: resident gallery
            pl.BlockSpec((bp, 1), lambda i: (0, 0)),   # labels as a column
            pl.BlockSpec((1, bp), lambda i: (0, 0)),   # labels as a row
        ],
        out_specs=pl.BlockSpec((tq, 1), lambda i: (i, 0)),
        scratch_shapes=[pltpu.VMEM((tq, bp), jnp.float32)],
        compiler_params=pltpu.CompilerParams(
            dimension_semantics=("parallel",)),
    )(features, lab_col, lab_row)

    # padded query rows were forced to exactly 0, so summing over bp is safe
    return 1.0 - jnp.sum(prec) / B


def _reference(features, labels, *, k, t1, t2):
    """Pure-JAX reference mirroring the PyTorch forward (direct-difference cdist)."""
    d = jnp.sqrt(jnp.maximum(
        jnp.sum((features[:, None, :] - features[None, :, :]) ** 2, axis=-1), 0.0))
    mask = (labels[:, None] == labels[None, :]).astype(jnp.float32)
    k_eff = float(k + 1)
    diff = d[:, None, :] - d[:, :, None]                 # [i, a, b] = d[i,b] - d[i,a]
    rank = jax.nn.sigmoid(diff / t2).sum(axis=1)
    prec = (jax.nn.sigmoid((k_eff - rank) / t1) * mask).sum(axis=1) / jnp.minimum(
        mask.sum(axis=1), k_eff)
    return 1.0 - prec.mean()


if __name__ == "__main__":
    key = jax.random.PRNGKey(0)
    kf, kl = jax.random.split(key)
    B, D = 8, 32
    features = jax.random.normal(kf, (B, D), dtype=jnp.float32)
    labels = jax.random.randint(kl, (B,), 0, 3, dtype=jnp.int32)

    loss = surrogate_precision_loss(features, labels, k=4,
                                    temperature1=1.0, temperature2=0.01)
    loss = jax.block_until_ready(loss)

    ref = _reference(features, labels, k=4, t1=1.0, t2=0.01)
    assert jnp.allclose(loss, ref, rtol=1e-4, atol=1e-3), (loss, ref)
    print("KERNEL_OK")
</pallas_src>

<mosaic_0001>
module attributes {stable_mosaic.version = 11 : i64} {
  func.func @_surrogate_precision_kernel(%arg0: i32, %arg1: memref<8x32xf32, #tpu.memory_space<vmem>>, %arg2: memref<8x1xi32, #tpu.memory_space<vmem>>, %arg3: memref<1x8xi32, #tpu.memory_space<vmem>>, %arg4: memref<8x1xf32, #tpu.memory_space<vmem>>, %arg5: memref<8x8xf32, #tpu.memory_space<vmem>>) attributes {dimension_semantics = [#tpu.dimension_semantics<parallel>], iteration_bounds = array<i64: 1>, scalar_prefetch = 0 : i64, scratch_operands = 1 : i64, tpu.core_type = #tpu.core_type<tc>, window_params = [{pipeline_mode = #tpu.pipeline_mode<synchronous>, transform_indices = @transform_0, window_bounds = array<i64: 8, 32>}, {pipeline_mode = #tpu.pipeline_mode<synchronous>, transform_indices = @transform_1, window_bounds = array<i64: 8, 1>}, {pipeline_mode = #tpu.pipeline_mode<synchronous>, transform_indices = @transform_2, window_bounds = array<i64: 1, 8>}, {transform_indices = @transform_3, window_bounds = array<i64: 8, 1>}]} {
    %c8_i32 = arith.constant 8 : i32
    %0 = arith.muli %arg0, %c8_i32 : i32
    %1 = tpu.assume_multiple %0, 8 : i32
    %c0 = arith.constant 0 : index
    %c0_0 = arith.constant 0 : index
    %2 = vector.load %arg1[%c0, %c0_0] : memref<8x32xf32, #tpu.memory_space<vmem>>, vector<8x32xf32>
    %3 = arith.index_cast %1 : i32 to index
    %c0_1 = arith.constant 0 : index
    %4 = vector.load %arg1[%3, %c0_1] : memref<8x32xf32, #tpu.memory_space<vmem>>, vector<8x32xf32>
    %5 = arith.index_cast %1 : i32 to index
    %c0_2 = arith.constant 0 : index
    %6 = vector.load %arg2[%5, %c0_2] : memref<8x1xi32, #tpu.memory_space<vmem>>, vector<8x1xi32>
    %c0_3 = arith.constant 0 : index
    %c0_4 = arith.constant 0 : index
    %7 = vector.load %arg3[%c0_3, %c0_4] : memref<1x8xi32, #tpu.memory_space<vmem>>, vector<1x8xi32>
    %8 = arith.mulf %4, %4 : vector<8x32xf32>
    %cst = arith.constant dense<0.000000e+00> : vector<8xf32>
    %9 = vector.multi_reduction <add>, %8, %cst [1] : vector<8x32xf32> to vector<8xf32>
    %10 = vector.shape_cast %9 : vector<8xf32> to vector<8x1xf32>
    %cst_5 = arith.constant 1.000000e+00 : f32
    %11 = vector.broadcast %cst_5 : f32 to vector<1x32xf32>
    %12 = arith.mulf %2, %2 : vector<8x32xf32>
    %cst_6 = arith.constant dense<0.000000e+00> : vector<1x8xf32>
    %13 = tpu.matmul %11, %12, %cst_6 {dimension_numbers = #tpu.dot_dimension_numbers<[1], [1], [0], [0], [0, 0, 1, 0], [], []>} : vector<1x32xf32>, vector<8x32xf32>, vector<1x8xf32> -> vector<1x8xf32>
    %cst_7 = arith.constant dense<0.000000e+00> : vector<8x8xf32>
    %14 = tpu.matmul %4, %2, %cst_7 {dimension_numbers = #tpu.dot_dimension_numbers<[1], [1], [0], [0], [0, 0, 1, 0], [], []>} : vector<8x32xf32>, vector<8x32xf32>, vector<8x8xf32> -> vector<8x8xf32>
    %15 = vector.broadcast %10 : vector<8x1xf32> to vector<8x8xf32>
    %16 = vector.broadcast %13 : vector<1x8xf32> to vector<8x8xf32>
    %17 = arith.addf %15, %16 : vector<8x8xf32>
    %cst_8 = arith.constant 2.000000e+00 : f32
    %18 = vector.broadcast %cst_8 : f32 to vector<8x8xf32>
    %19 = arith.mulf %18, %14 : vector<8x8xf32>
    %20 = arith.subf %17, %19 : vector<8x8xf32>
    %cst_9 = arith.constant 0.000000e+00 : f32
    %21 = vector.broadcast %cst_9 : f32 to vector<8x8xf32>
    %22 = arith.maximumf %20, %21 : vector<8x8xf32>
    %23 = math.sqrt %22 : vector<8x8xf32>
    %24 = tpu.iota {dimensions = array<i32: 0>} : vector<8x8xi32>
    %25 = vector.broadcast %1 : i32 to vector<8x8xi32>
    %26 = arith.addi %25, %24 : vector<8x8xi32>
    %27 = tpu.iota {dimensions = array<i32: 1>} : vector<8x8xi32>
    %28 = arith.cmpi eq, %26, %27 : vector<8x8xi32>
    %cst_10 = arith.constant 0.000000e+00 : f32
    %29 = vector.broadcast %cst_10 : f32 to vector<8x8xf32>
    %30 = arith.select %28, %29, %23 : vector<8x8xi1>, vector<8x8xf32>
    %31 = vector.shape_cast %30 : vector<8x8xf32> to vector<8x1x8xf32>
    %32 = vector.shape_cast %30 : vector<8x8xf32> to vector<8x8x1xf32>
    %33 = vector.broadcast %31 : vector<8x1x8xf32> to vector<8x8x8xf32>
    %34 = vector.broadcast %32 : vector<8x8x1xf32> to vector<8x8x8xf32>
    %35 = arith.subf %33, %34 : vector<8x8x8xf32>
    %cst_11 = arith.constant 5.000000e+01 : f32
    %36 = vector.broadcast %cst_11 : f32 to vector<8x8x8xf32>
    %37 = arith.mulf %35, %36 : vector<8x8x8xf32>
    %38 = math.tanh %37 : vector<8x8x8xf32>
    %cst_12 = arith.constant 5.000000e-01 : f32
    %39 = vector.broadcast %cst_12 : f32 to vector<8x8x8xf32>
    %40 = arith.mulf %39, %38 : vector<8x8x8xf32>
    %cst_13 = arith.constant 5.000000e-01 : f32
    %41 = vector.broadcast %cst_13 : f32 to vector<8x8x8xf32>
    %42 = arith.addf %40, %41 : vector<8x8x8xf32>
    %cst_14 = arith.constant dense<0.000000e+00> : vector<8x8xf32>
    %43 = vector.multi_reduction <add>, %42, %cst_14 [1] : vector<8x8x8xf32> to vector<8x8xf32>
    %44 = vector.broadcast %6 : vector<8x1xi32> to vector<8x8xi32>
    %45 = vector.broadcast %7 : vector<1x8xi32> to vector<8x8xi32>
    %46 = arith.cmpi eq, %44, %45 : vector<8x8xi32>
    %47 = arith.extui %46 : vector<8x8xi1> to vector<8x8xi32>
    %48 = arith.sitofp %47 : vector<8x8xi32> to vector<8x8xf32>
    %cst_15 = arith.constant 5.000000e+00 : f32
    %49 = vector.broadcast %cst_15 : f32 to vector<8x8xf32>
    %50 = arith.subf %49, %43 : vector<8x8xf32>
    %cst_16 = arith.constant 5.000000e-01 : f32
    %51 = vector.broadcast %cst_16 : f32 to vector<8x8xf32>
    %52 = arith.mulf %50, %51 : vector<8x8xf32>
    %53 = math.tanh %52 : vector<8x8xf32>
    %cst_17 = arith.constant 5.000000e-01 : f32
    %54 = vector.broadcast %cst_17 : f32 to vector<8x8xf32>
    %55 = arith.mulf %54, %53 : vector<8x8xf32>
    %cst_18 = arith.constant 5.000000e-01 : f32
    %56 = vector.broadcast %cst_18 : f32 to vector<8x8xf32>
    %57 = arith.addf %55, %56 : vector<8x8xf32>
    %58 = arith.mulf %57, %48 : vector<8x8xf32>
    %cst_19 = arith.constant dense<0.000000e+00> : vector<8xf32>
    %59 = vector.multi_reduction <add>, %58, %cst_19 [1] : vector<8x8xf32> to vector<8xf32>
    %60 = vector.shape_cast %59 : vector<8xf32> to vector<8x1xf32>
    %cst_20 = arith.constant dense<0.000000e+00> : vector<8xf32>
    %61 = vector.multi_reduction <add>, %48, %cst_20 [1] : vector<8x8xf32> to vector<8xf32>
    %62 = vector.shape_cast %61 : vector<8xf32> to vector<8x1xf32>
    %cst_21 = arith.constant 5.000000e+00 : f32
    %63 = vector.broadcast %cst_21 : f32 to vector<8x1xf32>
    %64 = arith.minimumf %62, %63 : vector<8x1xf32>
    %cst_22 = arith.constant 1.000000e+00 : f32
    %65 = vector.broadcast %cst_22 : f32 to vector<8x1xf32>
    %66 = arith.maximumf %64, %65 : vector<8x1xf32>
    %67 = arith.divf %60, %66 : vector<8x1xf32>
    %c0_23 = arith.constant 0 : index
    %c0_24 = arith.constant 0 : index
    %68 = vector.load %arg4[%c0_23, %c0_24] : memref<8x1xf32, #tpu.memory_space<vmem>>, vector<8x1xf32>
    tpu.vector_store %arg4[%c0_23, %c0_24], %67 {strides = array<i32>} : memref<8x1xf32, #tpu.memory_space<vmem>>, vector<8x1xf32>,
    return
  }
  func.func @transform_0(%arg0: i32) -> (i32, i32) {
    %c0_i32 = arith.constant 0 : i32
    %c0_i32_0 = arith.constant 0 : i32
    %c0_i32_1 = arith.constant 0 : i32
    return %c0_i32, %c0_i32_0 : i32, i32
  }
  func.func @transform_1(%arg0: i32) -> (i32, i32) {
    %c0_i32 = arith.constant 0 : i32
    %c0_i32_0 = arith.constant 0 : i32
    %c0_i32_1 = arith.constant 0 : i32
    return %c0_i32, %c0_i32_0 : i32, i32
  }
  func.func @transform_2(%arg0: i32) -> (i32, i32) {
    %c0_i32 = arith.constant 0 : i32
    %c0_i32_0 = arith.constant 0 : i32
    %c0_i32_1 = arith.constant 0 : i32
    return %c0_i32, %c0_i32_0 : i32, i32
  }
  func.func @transform_3(%arg0: i32) -> (i32, i32) {
    %c0_i32 = arith.constant 0 : i32
    %c0_i32_0 = arith.constant 0 : i32
    return %arg0, %c0_i32 : i32, i32
  }
}

</mosaic_0001>

<bundles_post_ra>
// kernel: tpu_custom_call.1
= control target key start
LH: loop header
LB: loop body
LE: loop exit
PB: predicated region body
PF: predicated region fallthrough
CT: control target
= control target key end

     0   :  { %vm22_vm0 = vcmask 261120   ;;  %v627_v0 = vmov 0.0   ;;  %vm628_vm1 = vmmov 0   ;;  %v629_v4 = vmov 1.0   ;;  %s720_s0 = inlined_call_operand.vmem [shape: f32[8,32], index: 0, kind: input, shape index: {}]   ;;  %s721_s1 = inlined_call_operand.vmem [shape: s32[8,1], index: 1, kind: input, shape index: {}]   ;;  %s722_s2 = inlined_call_operand.vmem [shape: s32[1,8], index: 2, kind: input, shape index: {}]   ;;  %s723_s3 = inlined_call_operand.vmem [shape: f32[8,1], index: 3, kind: output, shape index: {}]  }
   0x1   :  { %575 = vmatprep.subr.mxu0 %v627_v0  ;;  %v15_v1 = vld [vmem:[%s720_s0] sm:$0xff]  ;;  %580 = vmatprep.subr.mxu1 %v627_v0  ;;  %v630_v5 = vmov 0   ;;  %v179_v6 = vlaneseq  ;;  %v631_v19 = vmov 1966171168   ;;  %vm388_vm5 = vcmask 64512  }
   0x2   :  { %v26_v2 = vmul.f32 %v15_v1, %v15_v1  ;;  %581 = vmatpush3.xpose.msk.msra.mxu1 %vm22_vm0, %v15_v1  ;;  %577 = vmatprep.mubr.msk.f32.mxu0 %vm628_vm1, %v627_v0  ;;  %v205_v20 = vunpack.c.l.s4 %v631_v19  ;;  %v19_v37 = vld [vmem:[%s721_s1] sm:$0xff]  ;;  %vm528_vm7 = vcmask 1041409   ;;  %vm531_vm8 = vcmask 1042434  }
   0x3   :  { %582 = vmatprep.mubr.msk.f32.mxu1 %vm628_vm1, %v627_v0  ;;  %590 = vset.pattern.permute.xlu0 %v630_v5  ;;  %v659_v7 = vshrl.u32 %v179_v6, 7  ;;  %v199_v21 = vand.u32 127, %v179_v6  ;;  %vm534_vm9 = vcmask 1043459   ;;  %vm537_vm10 = vcmask 1044484  }
   0x4   :  { %576 = vmatpush3.xpose.msk.msra.mxu0 %vm22_vm0, %v26_v2  ;;  %v23_v3 = vsel %vm22_vm0, %v26_v2, 0.0  ;;  %v206_v23 = vunpack.c.0.s8 %v205_v20  ;;  %v569_v20 = vld [vmem:[%s722_s2] ss:$0 sm:$0xff]  ;;  %vm540_vm11 = vcmask 1045509   ;;  %vm543_vm12 = vcmask 1046534  }
   0x5   :  { %583 = vmatmul.mubr.msk.f32.vlgmr.msra.gmra.mrb[0].mxu1 %vm22_vm0, %v15_v1  ;;  %24 = vadd.xlane.f32.xlu0 %v23_v3  ;;  %v662_v8 = vsub.s32 0, %v659_v7  ;;  %vm200_vm2 = vcmp.eq.s32.totalorder %v659_v7, %v199_v21  ;;  %v268_v26 = vsub.s32 2, %v659_v7  ;;  %v261_v27 = vsub.s32 1, %v659_v7 }
   0x6   :  { %v209_v30 = vsub.s32 %v206_v23, %v659_v7  ;;  %v275_v36 = vsub.s32 3, %v659_v7  ;;  %v282_v45 = vsub.s32 4, %v659_v7  ;;  %v289_v60 = vsub.s32 5, %v659_v7 }
   0x7   :  { %578 = vmatmul.mubr.msk.f32.vlgmr.msra.gmra.mrb[0].mxu0 %vm22_vm0, %v629_v4  ;;  %v296_v63 = vsub.s32 6, %v659_v7  ;;  %v303_v2 = vsub.s32 7, %v659_v7  ;;  %vm546_vm13 = vcmask 1047559   ;;  %vm559_vm14 = vcmask 7168  }
  0x92   :  { %v25_v12 = vpop.xlane.xlu0 %24 }
  0xd8   :  { %v175_v9 = vpop.f32.mrb[0].mxu1 }
  0xd9   :  { %v584_v10 = vpop.f32.mrb[1].mxu1  ;;  %v184_v15 = vmul.f32 2.0, %v175_v9 }
  0xda   :  { %v99_v11 = vpop.f32.mrb[0].mxu0 }
  0xdb   :  { %v182_v13 = vrot.slane %v99_v11, %v662_v8  ;;  %v579_v14 = vpop.f32.mrb[1].mxu0 }
  0xdd   :  { %v183_v16 = vadd.f32 %v182_v13, %v25_v12 }
  0xdf   :  { %v185_v17 = vsub.f32 %v183_v16, %v184_v15 }
  0xe1   :  { %v186_v18 = vmax.f32 %v185_v17, 0.0 }
  0xe3   :  { %591 = vrsqrt.f32 %v186_v18  ;;  %vm189_vm3 = vcmp.eq.f32.partialorder %v186_v18, inf  ;;  %v192_v25 = vand.u32 2147483648, %v186_v18  ;;  %vm191_vm4 = vcmp.eq.f32.partialorder %v186_v18, 0.0 }
  0xed   :  { %v592_v22 = vpop.eup %591 }
  0xee   :  { %v188_v24 = vmul.f32 %v592_v22, %v186_v18 }
  0xf0   :  { %v190_v28 = vsel %vm189_vm3, %v186_v18, %v188_v24 }
  0xf1   :  { %v193_v29 = vsel %vm191_vm4, %v192_v25, %v190_v28 }
  0xf2   :  { %v201_v31 = vsel %vm200_vm2, 0.0, %v193_v29 }
  0xf3   :  { %v269_v32 = vrot.slane %v201_v31, %v268_v26  ;;  %v262_v33 = vrot.slane %v201_v31, %v261_v27  ;;  %v210_v34 = vrot.slane %v201_v31, %v209_v30  ;;  %v203_v35 = vcombine.high %v201_v31, %v201_v31 }
  0xf4   :  { %v255_v38 = vrot.slane %v201_v31, %v662_v8  ;;  %v276_v48 = vrot.slane %v201_v31, %v275_v36  ;;  %v283_v59 = vrot.slane %v201_v31, %v282_v45  ;;  %v290_v62 = vrot.slane %v201_v31, %v289_v60 }
  0xf5   :  { %271 = vbcast.lane.b32.xlu1 %v269_v32, 256  ;;  %264 = vbcast.lane.b32.xlu0 %v262_v33, 256  ;;  %v226_v39 = vrot.slane %v210_v34, %v209_v30  ;;  %v218_v40 = vcombine.high %v210_v34, %v210_v34  ;;  %v217_v41 = vrot.slane %v203_v35, %v209_v30 }
  0xf6   :  { %v297_v1 = vrot.slane %v201_v31, %v296_v63  ;;  %v304_v3 = vrot.slane %v201_v31, %v303_v2 }
  0xf7   :  { %v248_v42 = vcombine.high %v226_v39, %v226_v39  ;;  %v240_v43 = vrot.slane %v218_v40, %v209_v30  ;;  %v311_v44 = vrot.slane %v226_v39, %v662_v8  ;;  %v233_v46 = vrot.slane %v217_v41, %v209_v30 }
  0xf8   :  { %v219_v47 = vcombine.high %v217_v41, %v217_v41 }
  0xf9   :  { %257 = vbcast.lane.b32.xlu1 %v255_v38, 256  ;;  %446 = vperm.xlu0 %590, %v19_v37   ;;  %v319_v49 = vrot.slane %v248_v42, %v662_v8  ;;  %v315_v50 = vrot.slane %v240_v43, %v662_v8  ;;  %v250_v51 = vcombine.high %v240_v43, %v240_v43 }
  0xfa   :  { %v327_v52 = vrot.slane %v233_v46, %v662_v8  ;;  %v247_v53 = vrot.slane %v219_v47, %v209_v30  ;;  %v249_v54 = vcombine.high %v233_v46, %v233_v46 }
  0xfb   :  { %v323_v55 = vrot.slane %v250_v51, %v662_v8 }
  0xfc   :  { %v331_v56 = vrot.slane %v247_v53, %v662_v8  ;;  %v682_v57 = vrot.slane %v249_v54, %v662_v8  ;;  %v251_v58 = vcombine.high %v247_v53, %v247_v53 }
  0xfd   :  { %278 = vbcast.lane.b32.xlu1 %v276_v48, 256 }
  0xfe   :  { %v686_v61 = vrot.slane %v251_v58, %v662_v8 }
 0x101   :  { %285 = vbcast.lane.b32.xlu1 %v283_v59, 256 }
 0x105   :  { %292 = vbcast.lane.b32.xlu1 %v290_v62, 256 }
 0x109   :  { %299 = vbcast.lane.b32.xlu1 %v297_v1, 256 }
 0x10d   :  { %306 = vbcast.lane.b32.xlu1 %v304_v3, 256 }
 0x167   :  { %v272_v4 = vpop.permute.xlu1 %271  ;;  %v265_v5 = vpop.permute.xlu0 %264 }
 0x168   :  { %v350_v6 = vsub.f32 %v319_v49, %v272_v4  ;;  %v349_v9 = vsub.f32 %v315_v50, %v265_v5 }
 0x16a   :  { %v358_v10 = vmul.f32 50.0, %v350_v6  ;;  %v357_v11 = vmul.f32 50.0, %v349_v9 }
 0x16b   :  { %v258_v12 = vpop.permute.xlu1 %257 }
 0x16c   :  { %593 = vtanh.f32 %v358_v10  ;;  %v348_v8 = vsub.f32 %v311_v44, %v258_v12 }
 0x16d   :  { %595 = vtanh.f32 %v357_v11 }
 0x16e   :  { %v356_v13 = vmul.f32 50.0, %v348_v8 }
 0x16f   :  { %v279_v14 = vpop.permute.xlu1 %278 }
 0x170   :  { %597 = vtanh.f32 %v356_v13  ;;  %v351_v15 = vsub.f32 %v323_v55, %v279_v14 }
 0x172   :  { %v359_v16 = vmul.f32 50.0, %v351_v15 }
 0x173   :  { %v286_v17 = vpop.permute.xlu1 %285 }
 0x174   :  { %599 = vtanh.f32 %v359_v16  ;;  %v352_v7 = vsub.f32 %v327_v52, %v286_v17 }
 0x176   :  { %v594_v18 = vpop.eup %593  ;;  %v360_v19 = vmul.f32 50.0, %v352_v7 }
 0x177   :  { %v596_v21 = vpop.eup %595  ;;  %v374_v22 = vmul.f32 0.5, %v594_v18  ;;  %v293_v23 = vpop.permute.xlu1 %292 }
 0x178   :  { %v373_v24 = vmul.f32 0.5, %v596_v21  ;;  %601 = vtanh.f32 %v360_v19  ;;  %v353_v25 = vsub.f32 %v331_v56, %v293_v23  ;;  %v447_v26 = vpop.permute.xlu0 %446 }
 0x179   :  { %v382_v27 = vadd.f32 0.5, %v374_v22  ;;  %vm452_vm6 = vcmp.eq.s32.totalorder %v447_v26, %v569_v20 }
 0x17a   :  { %v598_v28 = vpop.eup %597  ;;  %v381_v29 = vadd.f32 0.5, %v373_v24  ;;  %v361_v30 = vmul.f32 50.0, %v353_v25  ;;  %v694_v31 = vsel %vm452_vm6, 1.0, %v627_v0 }
 0x17b   :  { %v403_v32 = vsel %vm388_vm5, %v382_v27, 0.0  ;;  %v372_v33 = vmul.f32 0.5, %v598_v28  ;;  %v300_v34 = vpop.permute.xlu1 %299  ;;  %v552_v35 = vsel %vm388_vm5, %v694_v31, 0.0 }
 0x17c   :  { %v404_v36 = vrot.slane %v403_v32, 4  ;;  %v396_v37 = vsel %vm388_vm5, %v381_v29, 0.0  ;;  %603 = vtanh.f32 %v361_v30  ;;  %v354_v38 = vsub.f32 %v682_v57, %v300_v34  ;;  %553 = vadd.xlane.f32.xlu1 %v552_v35 }
 0x17d   :  { %v397_v39 = vrot.slane %v396_v37, 4  ;;  %v380_v40 = vadd.f32 0.5, %v372_v33 }
 0x17e   :  { %v600_v41 = vpop.eup %599  ;;  %v405_v42 = vadd.f32 %v404_v36, %v403_v32  ;;  %v362_v0 = vmul.f32 50.0, %v354_v38 }
 0x17f   :  { %v398_v43 = vadd.f32 %v397_v39, %v396_v37  ;;  %v389_v44 = vsel %vm388_vm5, %v380_v40, 0.0  ;;  %v375_v45 = vmul.f32 0.5, %v600_v41  ;;  %v307_v46 = vpop.permute.xlu1 %306 }
 0x180   :  { %v406_v47 = vrot.slane %v405_v42, 2  ;;  %v390_v48 = vrot.slane %v389_v44, 4  ;;  %605 = vtanh.f32 %v362_v0  ;;  %v355_v49 = vsub.f32 %v686_v61, %v307_v46 }
 0x181   :  { %v399_v50 = vrot.slane %v398_v43, 2  ;;  %v383_v51 = vadd.f32 0.5, %v375_v45 }
 0x182   :  { %v602_v52 = vpop.eup %601  ;;  %v407_v53 = vadd.f32 %v406_v47, %v405_v42  ;;  %v391_v54 = vadd.f32 %v390_v48, %v389_v44  ;;  %v363_v55 = vmul.f32 50.0, %v355_v49 }
 0x183   :  { %v400_v56 = vadd.f32 %v399_v50, %v398_v43  ;;  %v410_v57 = vsel %vm388_vm5, %v383_v51, 0.0  ;;  %v376_v58 = vmul.f32 0.5, %v602_v52 }
 0x184   :  { %v408_v59 = vrot.slane %v407_v53, 1  ;;  %v392_v60 = vrot.slane %v391_v54, 2  ;;  %v411_v62 = vrot.slane %v410_v57, 4  ;;  %607 = vtanh.f32 %v363_v55 }
 0x185   :  { %v401_v63 = vrot.slane %v400_v56, 1  ;;  %v384_v1 = vadd.f32 0.5, %v376_v58  ;;  %v496_v55 = vrot.slane %v694_v31, 1 }
 0x186   :  { %v604_v2 = vpop.eup %603  ;;  %v409_v3 = vadd.f32 %v408_v59, %v407_v53  ;;  %v393_v4 = vadd.f32 %v392_v60, %v391_v54  ;;  %v412_v61 = vadd.f32 %v411_v62, %v410_v57 }
 0x187   :  { %v402_v5 = vadd.f32 %v401_v63, %v400_v56  ;;  %v417_v6 = vsel %vm388_vm5, %v384_v1, 0.0  ;;  %v377_v9 = vmul.f32 0.5, %v604_v2  ;;  %v497_v56 = vrot.slane %v694_v31, 2 }
 0x188   :  { %v457_v10 = vsub.f32 5.0, %v409_v3  ;;  %v394_v11 = vrot.slane %v393_v4, 1  ;;  %v413_v12 = vrot.slane %v412_v61, 2  ;;  %v418_v8 = vrot.slane %v417_v6, 4 }
 0x189   :  { %v456_v13 = vsub.f32 5.0, %v402_v5  ;;  %v385_v14 = vadd.f32 0.5, %v377_v9 }
 0x18a   :  { %v606_v15 = vpop.eup %605  ;;  %v465_v16 = vmul.f32 0.5, %v457_v10  ;;  %v395_v17 = vadd.f32 %v394_v11, %v393_v4  ;;  %v414_v7 = vadd.f32 %v413_v12, %v412_v61  ;;  %v419_v18 = vadd.f32 %v418_v8, %v417_v6 }
 0x18b   :  { %v464_v19 = vmul.f32 0.5, %v456_v13  ;;  %v424_v20 = vsel %vm388_vm5, %v385_v14, 0.0  ;;  %v378_v21 = vmul.f32 0.5, %v606_v15  ;;  %v498_v15 = vrot.slane %v694_v31, 3 }
 0x18c   :  { %609 = vtanh.f32 %v465_v16  ;;  %v455_v22 = vsub.f32 5.0, %v395_v17  ;;  %v415_v23 = vrot.slane %v414_v7, 1  ;;  %v420_v24 = vrot.slane %v419_v18, 2 }
 0x18d   :  { %611 = vtanh.f32 %v464_v19  ;;  %v425_v25 = vrot.slane %v424_v20, 4  ;;  %v386_v26 = vadd.f32 0.5, %v378_v21 }
 0x18e   :  { %v608_v27 = vpop.eup %607  ;;  %v463_v28 = vmul.f32 0.5, %v455_v22  ;;  %v416_v29 = vadd.f32 %v415_v23, %v414_v7  ;;  %v421_v30 = vadd.f32 %v420_v24, %v419_v18 }
 0x18f   :  { %v426_v32 = vadd.f32 %v425_v25, %v424_v20  ;;  %v431_v33 = vsel %vm388_vm5, %v386_v26, 0.0  ;;  %v379_v34 = vmul.f32 0.5, %v608_v27  ;;  %v499_v25 = vrot.slane %v694_v31, 4 }
 0x190   :  { %613 = vtanh.f32 %v463_v28  ;;  %v458_v35 = vsub.f32 5.0, %v416_v29  ;;  %v422_v36 = vrot.slane %v421_v30, 1  ;;  %v432_v37 = vrot.slane %v431_v33, 4 }
 0x191   :  { %v427_v38 = vrot.slane %v426_v32, 2  ;;  %v387_v39 = vadd.f32 0.5, %v379_v34  ;;  %v500_v34 = vrot.slane %v694_v31, 5 }
 0x192   :  { %v466_v40 = vmul.f32 0.5, %v458_v35  ;;  %v423_v41 = vadd.f32 %v422_v36, %v421_v30  ;;  %v433_v42 = vadd.f32 %v432_v37, %v431_v33 }
 0x193   :  { %v428_v0 = vadd.f32 %v427_v38, %v426_v32  ;;  %v438_v43 = vsel %vm388_vm5, %v387_v39, 0.0 }
 0x194   :  { %615 = vtanh.f32 %v466_v40  ;;  %v459_v44 = vsub.f32 5.0, %v423_v41  ;;  %v434_v45 = vrot.slane %v433_v42, 2  ;;  %v439_v46 = vrot.slane %v438_v43, 4 }
 0x195   :  { %v429_v47 = vrot.slane %v428_v0, 1 }
 0x196   :  { %v610_v48 = vpop.eup %609  ;;  %v467_v49 = vmul.f32 0.5, %v459_v44  ;;  %v435_v50 = vadd.f32 %v434_v45, %v433_v42  ;;  %v440_v51 = vadd.f32 %v439_v46, %v438_v43  ;;  %v501_v42 = vrot.slane %v694_v31, 6 }
 0x197   :  { %v612_v52 = vpop.eup %611  ;;  %v481_v53 = vmul.f32 0.5, %v610_v48  ;;  %v430_v54 = vadd.f32 %v429_v47, %v428_v0  ;;  %v502_v48 = vrot.slane %v694_v31, 7 }
 0x198   :  { %v480_v57 = vmul.f32 0.5, %v612_v52  ;;  %617 = vtanh.f32 %v467_v49  ;;  %v436_v58 = vrot.slane %v435_v50, 1  ;;  %v441_v59 = vrot.slane %v440_v51, 2 }
 0x199   :  { %v489_v60 = vadd.f32 0.5, %v481_v53  ;;  %v460_v62 = vsub.f32 5.0, %v430_v54 }
 0x19a   :  { %v614_v63 = vpop.eup %613  ;;  %v488_v1 = vadd.f32 0.5, %v480_v57  ;;  %v437_v2 = vadd.f32 %v436_v58, %v435_v50  ;;  %v442_v3 = vadd.f32 %v441_v59, %v440_v51 }
 0x19b   :  { %v479_v4 = vmul.f32 0.5, %v614_v63  ;;  %v468_v61 = vmul.f32 0.5, %v460_v62  ;;  %v513_v10 = vmul.f32 %v497_v56, %v489_v60 }
 0x19c   :  { %v461_v5 = vsub.f32 5.0, %v437_v2  ;;  %v443_v6 = vrot.slane %v442_v3, 1  ;;  %v512_v9 = vmul.f32 %v496_v55, %v488_v1 }
 0x19d   :  { %v487_v11 = vadd.f32 0.5, %v479_v4  ;;  %619 = vtanh.f32 %v468_v61  ;;  %v530_v18 = vrot.slane %v513_v10, 6 }
 0x19e   :  { %v616_v12 = vpop.eup %615  ;;  %v469_v8 = vmul.f32 0.5, %v461_v5  ;;  %v444_v13 = vadd.f32 %v443_v6, %v442_v3  ;;  %v527_v17 = vrot.slane %v512_v9, 7 }
 0x19f   :  { %v482_v14 = vmul.f32 0.5, %v616_v12  ;;  %v511_v16 = vmul.f32 %v694_v31, %v487_v11 }
 0x1a0   :  { %621 = vtanh.f32 %v469_v8  ;;  %v462_v7 = vsub.f32 5.0, %v444_v13 }
 0x1a1   :  { %v490_v19 = vadd.f32 0.5, %v482_v14  ;;  %v529_v20 = vsel %vm528_vm7, %v527_v17, %v511_v16 }
 0x1a2   :  { %v618_v21 = vpop.eup %617  ;;  %v470_v22 = vmul.f32 0.5, %v462_v7  ;;  %v532_v23 = vsel %vm531_vm8, %v530_v18, %v529_v20 }
 0x1a3   :  { %v483_v24 = vmul.f32 0.5, %v618_v21  ;;  %v514_v26 = vmul.f32 %v498_v15, %v490_v19 }
 0x1a4   :  { %623 = vtanh.f32 %v470_v22 }
 0x1a5   :  { %v491_v27 = vadd.f32 0.5, %v483_v24  ;;  %v533_v28 = vrot.slane %v514_v26, 5 }
 0x1a7   :  { %v620_v29 = vpop.eup %619  ;;  %v515_v30 = vmul.f32 %v499_v25, %v491_v27  ;;  %v535_v32 = vsel %vm534_vm9, %v533_v28, %v532_v23 }
 0x1a8   :  { %v484_v33 = vmul.f32 0.5, %v620_v29 }
 0x1a9   :  { %v536_v35 = vrot.slane %v515_v30, 4 }
 0x1aa   :  { %v622_v36 = vpop.eup %621  ;;  %v492_v37 = vadd.f32 0.5, %v484_v33 }
 0x1ab   :  { %v485_v38 = vmul.f32 0.5, %v622_v36  ;;  %v538_v39 = vsel %vm537_vm10, %v536_v35, %v535_v32 }
 0x1ac   :  { %v516_v40 = vmul.f32 %v500_v34, %v492_v37 }
 0x1ad   :  { %v493_v41 = vadd.f32 0.5, %v485_v38 }
 0x1ae   :  { %v624_v0 = vpop.eup %623  ;;  %v539_v43 = vrot.slane %v516_v40, 3 }
 0x1af   :  { %v486_v44 = vmul.f32 0.5, %v624_v0  ;;  %v517_v45 = vmul.f32 %v501_v42, %v493_v41 }
 0x1b0   :  { %v541_v46 = vsel %vm540_vm11, %v539_v43, %v538_v39 }
 0x1b1   :  { %v494_v47 = vadd.f32 0.5, %v486_v44  ;;  %v542_v49 = vrot.slane %v517_v45, 2 }
 0x1b3   :  { %v518_v50 = vmul.f32 %v502_v48, %v494_v47  ;;  %v544_v51 = vsel %vm543_vm12, %v542_v49, %v541_v46 }
 0x1b5   :  { %v545_v52 = vrot.slane %v518_v50, 1 }
 0x1b7   :  { %v547_v53 = vsel %vm546_vm13, %v545_v52, %v544_v51 }
 0x1b8   :  { %v549_v54 = vsel %vm388_vm5, %v547_v53, 0.0 }
 0x1b9   :  { %550 = vadd.xlane.f32.xlu0 %v549_v54 }
 0x209   :  { %v554_v55 = vpop.xlane.xlu1 %553 }
 0x20a   :  { %v555_v56 = vmin.f32 %v554_v55, 5.0 }
 0x20c   :  { %v556_v57 = vmax.f32 %v555_v56, 1.0 }
 0x20e   :  { %625 = vrcp.f32 %v556_v57 }
 0x218   :  { %v626_v58 = vpop.eup %625 }
 0x246   :  { %v551_v59 = vpop.xlane.xlu0 %550 }
 0x247   :  { %v558_v60 = vmul.f32 %v626_v58, %v551_v59 }
 0x249   :  { %560 = vst.msk [vmem:[%s723_s3] sm:$0xff] %vm559_vm14, %v558_v60 }

</bundles_post_ra>
